<compile_context>
chip_gen: v7x
topology: tpu7x:2x2x1
jax: 0.10.0
libtpu: 0.0.40
codegen_flags: <defaults>
</compile_context>

<pallas_src>
import jax
import jax.numpy as jnp
from jax.experimental import pallas as pl
from jax.experimental.pallas import tpu as pltpu


def _silu_smearing_kernel(d_ref, w_ref, out_ref):
    d = d_ref[...]                 # (1, TN)   lane-dense distances
    w = w_ref[...]                 # (K, 2)    resident folded weights
    w0 = w[:, 0:1]                 # (K, 1)    W[:, 0]
    w1b = w[:, 1:2]                # (K, 1)    W[:, 1] + bias
    z = w0 * d + w1b               # (K, TN)   VPU outer product (K=2 contraction; no MXU)
    # SiLU via tanh form: z * sigmoid(z) == 0.5 * z * (1 + tanh(z/2)); tanh -> EUP.
    out_ref[...] = 0.5 * z * (1.0 + jnp.tanh(0.5 * z))


def _choose_tile_n(n, max_tile_n):
    """Lane-tile size: big tiles, 128-lane aligned, >=2 grid steps for large N."""
    if n <= 256:
        return n                     # single block; block dim == full array dim is legal
    half = -(-n // 2)                # ceil(n / 2)  -> at least 2 grid iterations (v7x megacore)
    half = -(-half // 128) * 128     # round up to a multiple of 128 lanes
    return min(max_tile_n, half)


def silu_smearing(dist, weight, bias, *, max_tile_n=2048):
    """dist: any shape; weight: (num_output, 2); bias: (num_output,). Returns (N, num_output)."""
    d = dist.reshape(1, -1).astype(jnp.float32)                      # (1, N) lane-dense row
    n = d.shape[1]
    k = weight.shape[0]
    # Fold bias into the "ones" column: z[k, n] = dist[n]*W[k,0] + (W[k,1]+b[k]).
    w_packed = jnp.stack(
        [weight[:, 0], weight[:, 1] + bias], axis=1
    ).astype(jnp.float32)                                            # (K, 2)

    tile_n = _choose_tile_n(n, max_tile_n)
    grid = (pl.cdiv(n, tile_n),)

    out_t = pl.pallas_call(
        _silu_smearing_kernel,
        out_shape=jax.ShapeDtypeStruct((k, n), jnp.float32),
        grid=grid,
        in_specs=[
            pl.BlockSpec((1, tile_n), lambda i: (0, i)),   # dist tile (lane-dense)
            pl.BlockSpec((k, 2), lambda i: (0, 0)),        # folded weights, resident
        ],
        out_specs=pl.BlockSpec((k, tile_n), lambda i: (0, i)),
        compiler_params=pltpu.CompilerParams(
            dimension_semantics=("parallel",)),
    )(d, w_packed)

    # Module contract is (N, K); leave the reorientation to XLA (fusable downstream).
    return out_t.T


def _reference(dist, weight, bias):
    x = dist.reshape(-1, 1).astype(jnp.float32)
    x = jnp.concatenate([x, jnp.ones_like(x)], axis=1)               # (N, 2)
    z = x @ weight.T.astype(jnp.float32) + bias.astype(jnp.float32)
    return z * jax.nn.sigmoid(z)


if __name__ == "__main__":
    num_output = 50

    key = jax.random.PRNGKey(0)
    k_dist, k_w, k_b, k_dist2 = jax.random.split(key, 4)

    # Deterministic parameter init (nn.Linear-style uniform over +-1/sqrt(fan_in=2)).
    bound = 1.0 / jnp.sqrt(2.0)
    weight = jax.random.uniform(k_w, (num_output, 2), jnp.float32, -bound, bound)
    bias = jax.random.uniform(k_b, (num_output,), jnp.float32, -bound, bound)

    # Small example: 2 "systems" x 64 edge distances -> N = 128 rows.
    dist = jax.random.uniform(k_dist, (2, 64), jnp.float32, 0.0, 5.0)

    out = silu_smearing(dist, weight, bias)
    out = jax.block_until_ready(out)

    ref = _reference(dist, weight, bias)
    assert out.shape == (128, num_output)
    assert jnp.allclose(out, ref, atol=5e-5, rtol=1e-5)

    # Second check: ragged N (600 rows) exercises multi-step grid + masked last tile.
    dist2 = jax.random.uniform(k_dist2, (3, 200), jnp.float32, 0.0, 5.0)
    out2 = jax.block_until_ready(silu_smearing(dist2, weight, bias))
    ref2 = _reference(dist2, weight, bias)
    assert out2.shape == (600, num_output)
    assert jnp.allclose(out2, ref2, atol=5e-5, rtol=1e-5)

    print("KERNEL_OK")
</pallas_src>

<mosaic_0001>
module attributes {stable_mosaic.version = 11 : i64} {
  func.func @_silu_smearing_kernel(%arg0: i32, %arg1: memref<1x128xf32, #tpu.memory_space<vmem>>, %arg2: memref<50x2xf32, #tpu.memory_space<vmem>>, %arg3: memref<50x128xf32, #tpu.memory_space<vmem>>) attributes {dimension_semantics = [#tpu.dimension_semantics<parallel>], iteration_bounds = array<i64: 1>, scalar_prefetch = 0 : i64, scratch_operands = 0 : i64, tpu.core_type = #tpu.core_type<tc>, window_params = [{transform_indices = @transform_0, window_bounds = array<i64: 1, 128>}, {pipeline_mode = #tpu.pipeline_mode<synchronous>, transform_indices = @transform_1, window_bounds = array<i64: 50, 2>}, {transform_indices = @transform_2, window_bounds = array<i64: 50, 128>}]} {
    %c0 = arith.constant 0 : index
    %c0_0 = arith.constant 0 : index
    %0 = vector.load %arg1[%c0, %c0_0] : memref<1x128xf32, #tpu.memory_space<vmem>>, vector<1x128xf32>
    %c0_1 = arith.constant 0 : index
    %c0_2 = arith.constant 0 : index
    %1 = vector.load %arg2[%c0_1, %c0_2] : memref<50x2xf32, #tpu.memory_space<vmem>>, vector<50x2xf32>
    %2 = vector.extract_strided_slice %1 {offsets = [0, 0], sizes = [50, 1], strides = [1, 1]} : vector<50x2xf32> to vector<50x1xf32>
    %3 = vector.extract_strided_slice %1 {offsets = [0, 1], sizes = [50, 1], strides = [1, 1]} : vector<50x2xf32> to vector<50x1xf32>
    %4 = vector.broadcast %2 : vector<50x1xf32> to vector<50x128xf32>
    %5 = vector.broadcast %0 : vector<1x128xf32> to vector<50x128xf32>
    %6 = arith.mulf %4, %5 : vector<50x128xf32>
    %7 = vector.broadcast %3 : vector<50x1xf32> to vector<50x128xf32>
    %8 = arith.addf %6, %7 : vector<50x128xf32>
    %cst = arith.constant 5.000000e-01 : f32
    %9 = vector.broadcast %cst : f32 to vector<50x128xf32>
    %10 = arith.mulf %9, %8 : vector<50x128xf32>
    %cst_3 = arith.constant 5.000000e-01 : f32
    %11 = vector.broadcast %cst_3 : f32 to vector<50x128xf32>
    %12 = arith.mulf %11, %8 : vector<50x128xf32>
    %13 = math.tanh %12 : vector<50x128xf32>
    %cst_4 = arith.constant 1.000000e+00 : f32
    %14 = vector.broadcast %cst_4 : f32 to vector<50x128xf32>
    %15 = arith.addf %14, %13 : vector<50x128xf32>
    %16 = arith.mulf %10, %15 : vector<50x128xf32>
    %c0_5 = arith.constant 0 : index
    %c0_6 = arith.constant 0 : index
    %17 = vector.load %arg3[%c0_5, %c0_6] : memref<50x128xf32, #tpu.memory_space<vmem>>, vector<50x128xf32>
    tpu.vector_store %arg3[%c0_5, %c0_6], %16 {strides = array<i32>} : memref<50x128xf32, #tpu.memory_space<vmem>>, vector<50x128xf32>,
    return
  }
  func.func @transform_0(%arg0: i32) -> (i32, i32) {
    %c0_i32 = arith.constant 0 : i32
    %c0_i32_0 = arith.constant 0 : i32
    return %c0_i32, %arg0 : i32, i32
  }
  func.func @transform_1(%arg0: i32) -> (i32, i32) {
    %c0_i32 = arith.constant 0 : i32
    %c0_i32_0 = arith.constant 0 : i32
    %c0_i32_1 = arith.constant 0 : i32
    return %c0_i32, %c0_i32_0 : i32, i32
  }
  func.func @transform_2(%arg0: i32) -> (i32, i32) {
    %c0_i32 = arith.constant 0 : i32
    %c0_i32_0 = arith.constant 0 : i32
    return %c0_i32, %arg0 : i32, i32
  }
}

</mosaic_0001>

<bundles_post_ra>
// kernel: tpu_custom_call.1
= control target key start
LH: loop header
LB: loop body
LE: loop exit
PB: predicated region body
PF: predicated region fallthrough
CT: control target
= control target key end

     0   :  { %v202_v2 = vmov 0   ;;  %s258_s0 = inlined_call_operand.vmem [shape: f32[1,128], index: 0, kind: input, shape index: {}]   ;;  %s259_s1 = inlined_call_operand.vmem [shape: f32[50,2], index: 1, kind: input, shape index: {}]   ;;  %s260_s2 = inlined_call_operand.hbm [shape: f32[50,128], index: 2, kind: output, shape index: {}]  }
   0x1   :  { %v15_v0 = vld [vmem:[%s259_s1 + $0x10] sm:$0xff]  ;;  %v13_v1 = vld [vmem:[%s259_s1] sm:$0xff]  ;;  %161 = vset.pattern.permute.xlu1 %v202_v2  ;;  %160 = vset.pattern.permute.xlu0 %v202_v2 }
   0x2   :  { %32 = vperm.xlu1 %161, %v15_v0   ;;  %22 = vperm.xlu0 %160, %v13_v1  }
   0x3   :  { %7 = vsyncpa [#allocation3], 0  ;;  %v16_v3 = vld [vmem:[%s259_s1 + $0x18] sm:$0xff]  ;;  %v14_v4 = vld [vmem:[%s259_s1 + $0x8] sm:$0xff]  ;;  %v203_v8 = vmov 1  }
   0x4   :  { %v18_v5 = vld [vmem:[%s259_s1 + $0x28] sm:$0xff]  ;;  %v17_v6 = vld [vmem:[%s259_s1 + $0x20] sm:$0xff]  ;;  %v19_v7 = vld [vmem:[%s259_s1 + $0x30] sm:$0x3] }
   0x5   :  { %v154_v15 = vld [vmem:[%s258_s0] ss:$0 sm:$0xff]  ;;  %s204_s0 = smov [#allocation2]  }
   0x6   :  { %37 = vperm.xlu1 %161, %v16_v3   ;;  %27 = vperm.xlu0 %160, %v14_v4   ;;  %s143_s1 = sshll.u32 %s204_s0, 4  ;;  %s144_s1 = int_to_ptr.vmem [resolvable:$true] %s143_s1 }
   0x7   :  { %s178_s25 = scalar_lea.vmem %s144_s1, 896  ;;  %p183_p1 = scmp.lt.s32.totalorder %s144_s1, %s144_s1 }
   0x8   :  { %p179_p0 = scmp.ne.s32.totalorder %s144_s1, %s178_s25  ;;  %p184_p2 = scmp.lt.s32.totalorder %s178_s25, %s178_s25 }
   0xa   :  { %47 = vperm.xlu1 %161, %v18_v5   ;;  %42 = vperm.xlu0 %160, %v17_v6   ;;  %p185_p3 = por %p184_p2, %p183_p1 }
   0xc   :  { %p186_p4 = pnand %p185_p3, %p179_p0 }
   0xe   :  { %162 = vset.pattern.permute.xlu1 %v203_v8  ;;  %52 = vperm.xlu0 %160, %v19_v7  }
   0xf   :  { %69 = vperm.xlu1 %162, %v13_v1  }
  0x12   :  { %163 = vset.pattern.permute.xlu0 %v203_v8 }
  0x13   :  { %77 = vperm.xlu1 %162, %v15_v0   ;;  %73 = vperm.xlu0 %163, %v14_v4  }
  0x17   :  { %81 = vperm.xlu1 %162, %v16_v3   ;;  %85 = vperm.xlu0 %163, %v17_v6  }
  0x1b   :  { %89 = vperm.xlu1 %162, %v18_v5   ;;  %93 = vperm.xlu0 %163, %v19_v7  }
  0x81   :  { %v33_v9 = vpop.permute.xlu1 %32  ;;  %v23_v10 = vpop.permute.xlu0 %22 }
  0x82   :  { %v61_v16 = vmul.f32 %v154_v15, %v23_v10  ;;  %v63_v20 = vmul.f32 %v154_v15, %v33_v9 }
  0x85   :  { %v38_v11 = vpop.permute.xlu1 %37  ;;  %v28_v12 = vpop.permute.xlu0 %27 }
  0x86   :  { %v62_v21 = vmul.f32 %v154_v15, %v28_v12  ;;  %v64_v27 = vmul.f32 %v154_v15, %v38_v11 }
  0x89   :  { %v48_v13 = vpop.permute.xlu1 %47  ;;  %v43_v14 = vpop.permute.xlu0 %42 }
  0x8a   :  { %v65_v28 = vmul.f32 %v154_v15, %v43_v14  ;;  %v66_v35 = vmul.f32 %v154_v15, %v48_v13 }
  0x8d   :  { %v53_v17 = vpop.permute.xlu0 %52 }
  0x8e   :  { %v70_v18 = vpop.permute.xlu1 %69  ;;  %v67_v36 = vmul.f32 %v154_v15, %v53_v17 }
  0x8f   :  { %v96_v19 = vadd.f32 %v70_v18, %v61_v16 }
  0x91   :  { %v103_v22 = vmul.f32 0.5, %v96_v19 }
  0x92   :  { %v78_v23 = vpop.permute.xlu1 %77  ;;  %v74_v24 = vpop.permute.xlu0 %73 }
  0x93   :  { %164 = vtanh.f32 %v103_v22  ;;  %v98_v25 = vadd.f32 %v78_v23, %v63_v20  ;;  %v97_v26 = vadd.f32 %v74_v24, %v62_v21 }
  0x95   :  { %v105_v29 = vmul.f32 0.5, %v98_v25  ;;  %v104_v30 = vmul.f32 0.5, %v97_v26 }
  0x96   :  { %v82_v31 = vpop.permute.xlu1 %81  ;;  %v86_v32 = vpop.permute.xlu0 %85 }
  0x97   :  { %166 = vtanh.f32 %v105_v29  ;;  %v99_v33 = vadd.f32 %v82_v31, %v64_v27  ;;  %v100_v34 = vadd.f32 %v86_v32, %v65_v28 }
  0x98   :  { %168 = vtanh.f32 %v104_v30 }
  0x99   :  { %v106_v37 = vmul.f32 0.5, %v99_v33  ;;  %v107_v38 = vmul.f32 0.5, %v100_v34 }
  0x9a   :  { %v90_v39 = vpop.permute.xlu1 %89  ;;  %v94_v40 = vpop.permute.xlu0 %93 }
  0x9b   :  { %170 = vtanh.f32 %v106_v37  ;;  %v101_v41 = vadd.f32 %v90_v39, %v66_v35  ;;  %v102_v42 = vadd.f32 %v94_v40, %v67_v36 }
  0x9c   :  { %172 = vtanh.f32 %v107_v38 }
  0x9d   :  { %v165_v43 = vpop.eup %164  ;;  %v108_v44 = vmul.f32 0.5, %v101_v41  ;;  %v109_v45 = vmul.f32 0.5, %v102_v42 }
  0x9e   :  { %v117_v46 = vadd.f32 1.0, %v165_v43 }
  0x9f   :  { %174 = vtanh.f32 %v108_v44 }
  0xa0   :  { %v124_v47 = vmul.f32 %v117_v46, %v103_v22  ;;  %176 = vtanh.f32 %v109_v45 }
  0xa1   :  { %v167_v48 = vpop.eup %166 }
  0xa2   :  { %v169_v49 = vpop.eup %168  ;;  %131 = vst [vmem:[#allocation2] sm:$0xff] %v124_v47  ;;  %v119_v50 = vadd.f32 1.0, %v167_v48 }
  0xa3   :  { %v118_v51 = vadd.f32 1.0, %v169_v49 }
  0xa4   :  { %v126_v52 = vmul.f32 %v119_v50, %v105_v29 }
  0xa5   :  { %v171_v53 = vpop.eup %170  ;;  %v125_v54 = vmul.f32 %v118_v51, %v104_v30 }
  0xa6   :  { %v173_v55 = vpop.eup %172  ;;  %133 = vst [vmem:[#allocation2 + $0x10] sm:$0xff] %v126_v52  ;;  %v120_v56 = vadd.f32 1.0, %v171_v53 }
  0xa7   :  { %132 = vst [vmem:[#allocation2 + $0x8] sm:$0xff] %v125_v54  ;;  %v121_v57 = vadd.f32 1.0, %v173_v55 }
  0xa8   :  { %v127_v58 = vmul.f32 %v120_v56, %v106_v37 }
  0xa9   :  { %v175_v59 = vpop.eup %174  ;;  %v128_v60 = vmul.f32 %v121_v57, %v107_v38 }
  0xaa   :  { %v177_v61 = vpop.eup %176  ;;  %134 = vst [vmem:[#allocation2 + $0x18] sm:$0xff] %v127_v58  ;;  %v122_v62 = vadd.f32 1.0, %v175_v59 }
  0xab   :  { %135 = vst [vmem:[#allocation2 + $0x20] sm:$0xff] %v128_v60  ;;  %v123_v63 = vadd.f32 1.0, %v177_v61 }
  0xac   :  { %v129_v0 = vmul.f32 %v122_v62, %v108_v44 }
  0xad   :  { %v130_v1 = vmul.f32 %v123_v63, %v109_v45 }
  0xae   :  { %136 = vst [vmem:[#allocation2 + $0x28] sm:$0xff] %v129_v0 }
  0xaf   :  { %137 = vst [vmem:[#allocation2 + $0x30] sm:$0x3] %v130_v1 }
  0xb0   :  { %189 = shalt.err (!%p186_p4)
}
  0xb1   :  { %s190_s28 = scalar_lea.hbm %s260_s2, 896 }
  0xb2   :  { %p191_p5 = scmp.ne.s32.totalorder %s260_s2, %s190_s28  ;;  %p194_p6 = scmp.lt.u32.totalorder %s190_s28, %s260_s2 }
  0xb4   :  { %p196_p7 = pnand %p194_p6, %p191_p5 }
  0xb6   :  { %199 = shalt.err (!%p196_p7)
}
  0xb7   :  { %s205_s5 = smov 128   ;;  %s206_s6 = smov 8  }
  0xb8   :  { %149 = dma.vmem_to_hbm [thread:$0]  %s144_s1, 896, %s260_s2, [#allocation3], %s205_s5, %s205_s5, %s206_s6  }
  0xb9   :  { %200 = dma.done.wait [#allocation3], 896  }
  0xba   :  { %201 = vsyncadd [#allocation3], 4294966400 }
  0xbb   :  { %153 = vsyncpa [#allocation3], 1 }

</bundles_post_ra>
